<compile_context>
chip_gen: v5e
topology: v5e:2x2
jax: 0.10.0
libtpu: 0.0.40
codegen_flags: <defaults>
</compile_context>

<pallas_src>
import jax
import jax.numpy as jnp
from jax.experimental import pallas as pl
from jax.experimental.pallas import tpu as pltpu

PAD = 128    # lane-padded feature width for the hidden layers
OUT_W = 8    # narrow output width: lanes 0..3 actions, lane 4 value, 5..7 zero


def _round_up(n, m):
    return ((n + m - 1) // m) * m


def _pod_kernel(x_ref, w1_ref, wr_ref, wh2_ref, b_ref, ac_ref, out_ref):
    x = x_ref[...]                     # [TB, 56]
    b1 = b_ref[0:1, :]                 # encoder layer 1 bias
    b2 = b_ref[1:2, :]                 # encoder layer 2 bias
    bh1 = b_ref[2:3, :]                # fused heads hidden bias (ba1 | bv1)

    # --- encoder: Linear+ReLU (56->24), Linear+ReLU (24->16) ---
    h = jnp.maximum(
        jnp.dot(x, w1_ref[...], preferred_element_type=jnp.float32) + b1, 0.0)
    h = jnp.maximum(
        jnp.dot(h, wr_ref[0], preferred_element_type=jnp.float32) + b2, 0.0)

    # --- fused heads hidden layer: cols 0:12 action-hidden, 12:24 value-hidden ---
    h = jnp.maximum(
        jnp.dot(h, wr_ref[1], preferred_element_type=jnp.float32) + bh1, 0.0)

    # --- fused heads output layer, native 8-lane output ---
    # raw lane 0 = 2 * (raw angle)  (x2 pre-scale folded into wh2/bh2 at pack time)
    # raw lanes 1..3 = raw thrust/shield/boost; lane 4 = raw value; lanes 5..7 = 0
    raw = jnp.dot(h, wh2_ref[...], preferred_element_type=jnp.float32) + ac_ref[0:1, :]

    # Per-lane activation in one EUP pass:
    #   lane 0: 2*sigmoid(2z) - 1 = tanh(z)   (a=2, m=0, c=-1)
    #   lanes 1..3: sigmoid                    (a=1, m=0, c=0)
    #   lane 4: identity (value)               (a=0, m=1, c=0)
    #   lanes 5..7: zero                       (a=0, m=0, c=0)
    s = jax.nn.sigmoid(raw)
    out_ref[...] = ac_ref[1:2, :] * s + ac_ref[2:3, :] * raw + ac_ref[3:4, :]


def pack_params(params):
    """Pad & pack the 12 weight/bias tensors ONCE into 5 kernel inputs.

    Weights are stored [in, out] so the kernel computes x @ W + b.

    Correctness invariant: every padded lane/row is EXACTLY zero (zero weight
    columns/rows + zero bias) and the encoder/hidden activations are ReLU, so
    dead lanes stay zero through every layer.  If a non-ReLU encoder activation
    or a non-zero padded bias is ever introduced, dead lanes would leak into the
    fused-head matmuls.

    Returns (w1_p [56,128], w_rest [2,128,128], wh2 [128,8],
             biases [8,128], act_consts [8,8])."""
    (w1, b1), (w2, b2), (wa1, ba1), (wa2, ba2), (wv1, bv1), (wv2, bv2) = params
    obs = w1.shape[0]
    ah = wa1.shape[1]     # action hidden size (12)
    vh = wv1.shape[1]     # value hidden size (12)

    # layer 1 stays at its natural K=56 so x needs no lane padding.
    w1_p = jnp.zeros((obs, PAD), jnp.float32).at[:, :w1.shape[1]].set(w1)

    w2_p = jnp.zeros((PAD, PAD), jnp.float32)
    w2_p = w2_p.at[:w2.shape[0], :w2.shape[1]].set(w2)

    # fused heads hidden layer: [16, 24] = wa1 | wv1 side by side.
    wh1 = jnp.zeros((PAD, PAD), jnp.float32)
    wh1 = wh1.at[:wa1.shape[0], :ah].set(wa1)
    wh1 = wh1.at[:wv1.shape[0], ah:ah + vh].set(wv1)

    w_rest = jnp.stack([w2_p, wh1], axis=0)          # [2, 128, 128]

    # fused heads output layer: [24 -> 8], block-diagonal.
    # Column 0 (angle) pre-scaled by 2 for the tanh(z) = 2*sigmoid(2z) - 1 trick.
    wh2 = jnp.zeros((PAD, OUT_W), jnp.float32)
    wh2 = wh2.at[:ah, 0:1].set(2.0 * wa2[:, 0:1])
    wh2 = wh2.at[:ah, 1:4].set(wa2[:, 1:4])
    wh2 = wh2.at[ah:ah + vh, 4:5].set(wv2)

    biases = jnp.zeros((8, PAD), jnp.float32)
    biases = biases.at[0, :b1.shape[0]].set(b1)
    biases = biases.at[1, :b2.shape[0]].set(b2)
    biases = biases.at[2, :ah].set(ba1)
    biases = biases.at[2, ah:ah + vh].set(bv1)

    # activation constants, 8 lanes each:
    #   row 0: fused output bias (lane 0 pre-scaled by 2, lane 4 = value bias)
    #   row 1: sigmoid scale a, row 2: raw passthrough m, row 3: offset c
    act = jnp.zeros((8, OUT_W), jnp.float32)
    act = act.at[0, 0].set(2.0 * ba2[0])
    act = act.at[0, 1:4].set(ba2[1:4])
    act = act.at[0, 4].set(bv2[0])
    act = act.at[1, 0:4].set(jnp.array([2.0, 1.0, 1.0, 1.0], jnp.float32))
    act = act.at[2, 4].set(1.0)
    act = act.at[3, 0].set(-1.0)

    return w1_p, w_rest, wh2, biases, act


def pod_network_forward(x, packed_params, *, block_b=2048, core_parallel=False):
    """x: [B, 56] float32, packed_params from pack_params().

    block_b: batch tile (rows per grid step). 2048 is a good default on v5e;
    2048-4096 on v6e/v7x.  core_parallel=True enables pltpu.CORE_PARALLEL grid
    sharding across v7x's 2 TensorCores (leave False on v5e/v6e).

    Returns (actions [B,4], value [B,1], special_probs [B,2])."""
    w1_p, w_rest, wh2_p, biases, act_consts = packed_params
    B, D = x.shape

    # Pad the batch only to a multiple of 8 sublanes (no full pad to TB); the
    # cdiv grid handles a ragged last tile.
    Bp = _round_up(B, 8)
    x_p = x if Bp == B else jnp.pad(x, ((0, Bp - B), (0, 0)))
    TB = min(_round_up(block_b, 8), Bp)
    grid = (pl.cdiv(Bp, TB),)

    sem = pltpu.CORE_PARALLEL if core_parallel else "parallel"

    out = pl.pallas_call(
        _pod_kernel,
        grid=grid,
        in_specs=[
            pl.BlockSpec((TB, D), lambda i: (i, 0)),            # x: streamed per step
            pl.BlockSpec((D, PAD), lambda i: (0, 0)),           # w1: VMEM-resident
            pl.BlockSpec((2, PAD, PAD), lambda i: (0, 0, 0)),   # w2 | wh1: resident
            pl.BlockSpec((PAD, OUT_W), lambda i: (0, 0)),       # wh2: resident
            pl.BlockSpec((8, PAD), lambda i: (0, 0)),           # encoder/head biases
            pl.BlockSpec((8, OUT_W), lambda i: (0, 0)),         # activation constants
        ],
        out_specs=pl.BlockSpec((TB, OUT_W), lambda i: (i, 0)),  # narrow 8-lane output
        out_shape=jax.ShapeDtypeStruct((Bp, OUT_W), jnp.float32),
        compiler_params=pltpu.CompilerParams(
            dimension_semantics=(sem,),
            # Explicit scoped-VMEM limit so big TB never hits v5e's 16 MiB default.
            vmem_limit_bytes=32 * 1024 * 1024),
    )(x_p, w1_p, w_rest, wh2_p, biases, act_consts)

    actions = out[:B, 0:4]
    value = out[:B, 4:5]
    special_probs = actions[:, 2:4]
    return actions, value, special_probs


def init_params(key, observation_dim=56, hidden_sizes=(24, 16),
                action_hidden_size=12, value_hidden_size=12):
    """Deterministic init mimicking torch.nn.Linear default U[-1/sqrt(fan_in), ...].

    Weights are stored [in, out] so forward computes x @ W + b."""
    sizes = []
    prev = observation_dim
    for h in hidden_sizes:
        sizes.append((prev, h))
        prev = h
    enc_out = prev
    sizes += [(enc_out, action_hidden_size), (action_hidden_size, 4),
              (enc_out, value_hidden_size), (value_hidden_size, 1)]

    params = []
    for (fan_in, fan_out) in sizes:
        key, kw, kb = jax.random.split(key, 3)
        bound = 1.0 / jnp.sqrt(fan_in)
        w = jax.random.uniform(kw, (fan_in, fan_out), jnp.float32, -bound, bound)
        b = jax.random.uniform(kb, (fan_out,), jnp.float32, -bound, bound)
        params.append((w, b))
    return params


def reference_forward(x, params):
    (w1, b1), (w2, b2), (wa1, ba1), (wa2, ba2), (wv1, bv1), (wv2, bv2) = params
    h = jnp.maximum(x @ w1 + b1, 0.0)
    h = jnp.maximum(h @ w2 + b2, 0.0)
    ra = jnp.maximum(h @ wa1 + ba1, 0.0) @ wa2 + ba2
    val = jnp.maximum(h @ wv1 + bv1, 0.0) @ wv2 + bv2
    angle = jnp.tanh(ra[:, 0:1])   # kernel uses 2*sigmoid(2x)-1: exact math, ~1e-7 rounding diff
    rest = jax.nn.sigmoid(ra[:, 1:4])
    actions = jnp.concatenate([angle, rest], axis=1)
    return actions, val, actions[:, 2:4]


if __name__ == "__main__":
    key = jax.random.PRNGKey(0)
    k_params, k_x1, k_x2 = jax.random.split(key, 3)

    OBS = 56
    params = init_params(k_params, observation_dim=OBS)
    packed = pack_params(params)            # padded/packed once, reused every call

    # Exercise: multiple-of-8 batch and ragged batch; single-tile and multi-tile grids.
    test_cases = [
        (jax.random.normal(k_x1, (16, OBS), jnp.float32), (8, 2048)),
        (jax.random.normal(k_x2, (13, OBS), jnp.float32), (8, 2048)),
    ]
    for x, block_sizes in test_cases:
        ref_a, ref_v, ref_s = reference_forward(x, params)
        for bb in block_sizes:
            actions, value, special = pod_network_forward(x, packed, block_b=bb)
            jax.block_until_ready((actions, value, special))
            assert jnp.allclose(actions, ref_a, atol=3e-5), "actions mismatch"
            assert jnp.allclose(value, ref_v, atol=3e-5), "value mismatch"
            assert jnp.allclose(special, ref_s, atol=3e-5), "special_probs mismatch"

    print("KERNEL_OK")
</pallas_src>

<mosaic_0001>
module attributes {stable_mosaic.version = 11 : i64} {
  func.func @_pod_kernel(%arg0: i32, %arg1: memref<8x56xf32, #tpu.memory_space<vmem>>, %arg2: memref<56x128xf32, #tpu.memory_space<vmem>>, %arg3: memref<2x128x128xf32, #tpu.memory_space<vmem>>, %arg4: memref<128x8xf32, #tpu.memory_space<vmem>>, %arg5: memref<8x128xf32, #tpu.memory_space<vmem>>, %arg6: memref<8x8xf32, #tpu.memory_space<vmem>>, %arg7: memref<8x8xf32, #tpu.memory_space<vmem>>) attributes {dimension_semantics = [#tpu.dimension_semantics<parallel>], iteration_bounds = array<i64: 2>, scalar_prefetch = 0 : i64, scratch_operands = 0 : i64, tpu.core_type = #tpu.core_type<tc>, window_params = [{transform_indices = @transform_0, window_bounds = array<i64: 8, 56>}, {pipeline_mode = #tpu.pipeline_mode<synchronous>, transform_indices = @transform_1, window_bounds = array<i64: 56, 128>}, {pipeline_mode = #tpu.pipeline_mode<synchronous>, transform_indices = @transform_2, window_bounds = array<i64: 2, 128, 128>}, {pipeline_mode = #tpu.pipeline_mode<synchronous>, transform_indices = @transform_3, window_bounds = array<i64: 128, 8>}, {pipeline_mode = #tpu.pipeline_mode<synchronous>, transform_indices = @transform_4, window_bounds = array<i64: 8, 128>}, {pipeline_mode = #tpu.pipeline_mode<synchronous>, transform_indices = @transform_5, window_bounds = array<i64: 8, 8>}, {transform_indices = @transform_6, window_bounds = array<i64: 8, 8>}]} {
    %c0 = arith.constant 0 : index
    %c0_0 = arith.constant 0 : index
    %0 = vector.load %arg1[%c0, %c0_0] : memref<8x56xf32, #tpu.memory_space<vmem>>, vector<8x56xf32>
    %c0_1 = arith.constant 0 : index
    %c0_2 = arith.constant 0 : index
    %1 = vector.load %arg5[%c0_1, %c0_2] : memref<8x128xf32, #tpu.memory_space<vmem>>, vector<1x128xf32>
    %c1 = arith.constant 1 : index
    %c0_3 = arith.constant 0 : index
    %2 = vector.load %arg5[%c1, %c0_3] : memref<8x128xf32, #tpu.memory_space<vmem>>, vector<1x128xf32>
    %c2 = arith.constant 2 : index
    %c0_4 = arith.constant 0 : index
    %3 = vector.load %arg5[%c2, %c0_4] : memref<8x128xf32, #tpu.memory_space<vmem>>, vector<1x128xf32>
    %c0_5 = arith.constant 0 : index
    %c0_6 = arith.constant 0 : index
    %4 = vector.load %arg2[%c0_5, %c0_6] : memref<56x128xf32, #tpu.memory_space<vmem>>, vector<56x128xf32>
    %cst = arith.constant dense<0.000000e+00> : vector<8x128xf32>
    %5 = tpu.matmul %0, %4, %cst {dimension_numbers = #tpu.dot_dimension_numbers<[1], [0], [0], [1], [0, 0, 1, 1], [], []>} : vector<8x56xf32>, vector<56x128xf32>, vector<8x128xf32> -> vector<8x128xf32>
    %6 = vector.broadcast %1 : vector<1x128xf32> to vector<8x128xf32>
    %7 = arith.addf %5, %6 : vector<8x128xf32>
    %cst_7 = arith.constant 0.000000e+00 : f32
    %8 = vector.broadcast %cst_7 : f32 to vector<8x128xf32>
    %9 = arith.maximumf %7, %8 : vector<8x128xf32>
    %c0_8 = arith.constant 0 : index
    %c0_9 = arith.constant 0 : index
    %c0_10 = arith.constant 0 : index
    %10 = vector.load %arg3[%c0_8, %c0_9, %c0_10] : memref<2x128x128xf32, #tpu.memory_space<vmem>>, vector<1x128x128xf32>
    %11 = vector.shape_cast %10 : vector<1x128x128xf32> to vector<128x128xf32>
    %cst_11 = arith.constant dense<0.000000e+00> : vector<8x128xf32>
    %12 = tpu.matmul %9, %11, %cst_11 {dimension_numbers = #tpu.dot_dimension_numbers<[1], [0], [0], [1], [0, 0, 1, 1], [], []>} : vector<8x128xf32>, vector<128x128xf32>, vector<8x128xf32> -> vector<8x128xf32>
    %13 = vector.broadcast %2 : vector<1x128xf32> to vector<8x128xf32>
    %14 = arith.addf %12, %13 : vector<8x128xf32>
    %cst_12 = arith.constant 0.000000e+00 : f32
    %15 = vector.broadcast %cst_12 : f32 to vector<8x128xf32>
    %16 = arith.maximumf %14, %15 : vector<8x128xf32>
    %c1_13 = arith.constant 1 : index
    %c0_14 = arith.constant 0 : index
    %c0_15 = arith.constant 0 : index
    %17 = vector.load %arg3[%c1_13, %c0_14, %c0_15] : memref<2x128x128xf32, #tpu.memory_space<vmem>>, vector<1x128x128xf32>
    %18 = vector.shape_cast %17 : vector<1x128x128xf32> to vector<128x128xf32>
    %cst_16 = arith.constant dense<0.000000e+00> : vector<8x128xf32>
    %19 = tpu.matmul %16, %18, %cst_16 {dimension_numbers = #tpu.dot_dimension_numbers<[1], [0], [0], [1], [0, 0, 1, 1], [], []>} : vector<8x128xf32>, vector<128x128xf32>, vector<8x128xf32> -> vector<8x128xf32>
    %20 = vector.broadcast %3 : vector<1x128xf32> to vector<8x128xf32>
    %21 = arith.addf %19, %20 : vector<8x128xf32>
    %cst_17 = arith.constant 0.000000e+00 : f32
    %22 = vector.broadcast %cst_17 : f32 to vector<8x128xf32>
    %23 = arith.maximumf %21, %22 : vector<8x128xf32>
    %c0_18 = arith.constant 0 : index
    %c0_19 = arith.constant 0 : index
    %24 = vector.load %arg4[%c0_18, %c0_19] : memref<128x8xf32, #tpu.memory_space<vmem>>, vector<128x8xf32>
    %cst_20 = arith.constant dense<0.000000e+00> : vector<8x8xf32>
    %25 = tpu.matmul %23, %24, %cst_20 {dimension_numbers = #tpu.dot_dimension_numbers<[1], [0], [0], [1], [0, 0, 1, 1], [], []>} : vector<8x128xf32>, vector<128x8xf32>, vector<8x8xf32> -> vector<8x8xf32>
    %c0_21 = arith.constant 0 : index
    %c0_22 = arith.constant 0 : index
    %26 = vector.load %arg6[%c0_21, %c0_22] : memref<8x8xf32, #tpu.memory_space<vmem>>, vector<1x8xf32>
    %27 = vector.broadcast %26 : vector<1x8xf32> to vector<8x8xf32>
    %28 = arith.addf %25, %27 : vector<8x8xf32>
    %29 = arith.negf %28 : vector<8x8xf32>
    %30 = math.exp %29 : vector<8x8xf32>
    %cst_23 = arith.constant 1.000000e+00 : f32
    %31 = vector.broadcast %cst_23 : f32 to vector<8x8xf32>
    %32 = arith.addf %31, %30 : vector<8x8xf32>
    %33 = arith.divf %31, %32 : vector<8x8xf32>
    %c1_24 = arith.constant 1 : index
    %c0_25 = arith.constant 0 : index
    %34 = vector.load %arg6[%c1_24, %c0_25] : memref<8x8xf32, #tpu.memory_space<vmem>>, vector<1x8xf32>
    %35 = vector.broadcast %34 : vector<1x8xf32> to vector<8x8xf32>
    %36 = arith.mulf %35, %33 : vector<8x8xf32>
    %c2_26 = arith.constant 2 : index
    %c0_27 = arith.constant 0 : index
    %37 = vector.load %arg6[%c2_26, %c0_27] : memref<8x8xf32, #tpu.memory_space<vmem>>, vector<1x8xf32>
    %38 = vector.broadcast %37 : vector<1x8xf32> to vector<8x8xf32>
    %39 = arith.mulf %38, %28 : vector<8x8xf32>
    %40 = arith.addf %36, %39 : vector<8x8xf32>
    %c3 = arith.constant 3 : index
    %c0_28 = arith.constant 0 : index
    %41 = vector.load %arg6[%c3, %c0_28] : memref<8x8xf32, #tpu.memory_space<vmem>>, vector<1x8xf32>
    %42 = vector.broadcast %41 : vector<1x8xf32> to vector<8x8xf32>
    %43 = arith.addf %40, %42 : vector<8x8xf32>
    %c0_29 = arith.constant 0 : index
    %c0_30 = arith.constant 0 : index
    %44 = vector.load %arg7[%c0_29, %c0_30] : memref<8x8xf32, #tpu.memory_space<vmem>>, vector<8x8xf32>
    tpu.vector_store %arg7[%c0_29, %c0_30], %43 {strides = array<i32>} : memref<8x8xf32, #tpu.memory_space<vmem>>, vector<8x8xf32>,
    return
  }
  func.func @transform_0(%arg0: i32) -> (i32, i32) {
    %c0_i32 = arith.constant 0 : i32
    %c0_i32_0 = arith.constant 0 : i32
    return %arg0, %c0_i32 : i32, i32
  }
  func.func @transform_1(%arg0: i32) -> (i32, i32) {
    %c0_i32 = arith.constant 0 : i32
    %c0_i32_0 = arith.constant 0 : i32
    %c0_i32_1 = arith.constant 0 : i32
    return %c0_i32, %c0_i32_0 : i32, i32
  }
  func.func @transform_2(%arg0: i32) -> (i32, i32, i32) {
    %c0_i32 = arith.constant 0 : i32
    %c0_i32_0 = arith.constant 0 : i32
    %c0_i32_1 = arith.constant 0 : i32
    %c0_i32_2 = arith.constant 0 : i32
    return %c0_i32, %c0_i32_0, %c0_i32_1 : i32, i32, i32
  }
  func.func @transform_3(%arg0: i32) -> (i32, i32) {
    %c0_i32 = arith.constant 0 : i32
    %c0_i32_0 = arith.constant 0 : i32
    %c0_i32_1 = arith.constant 0 : i32
    return %c0_i32, %c0_i32_0 : i32, i32
  }
  func.func @transform_4(%arg0: i32) -> (i32, i32) {
    %c0_i32 = arith.constant 0 : i32
    %c0_i32_0 = arith.constant 0 : i32
    %c0_i32_1 = arith.constant 0 : i32
    return %c0_i32, %c0_i32_0 : i32, i32
  }
  func.func @transform_5(%arg0: i32) -> (i32, i32) {
    %c0_i32 = arith.constant 0 : i32
    %c0_i32_0 = arith.constant 0 : i32
    %c0_i32_1 = arith.constant 0 : i32
    return %c0_i32, %c0_i32_0 : i32, i32
  }
  func.func @transform_6(%arg0: i32) -> (i32, i32) {
    %c0_i32 = arith.constant 0 : i32
    %c0_i32_0 = arith.constant 0 : i32
    return %arg0, %c0_i32 : i32, i32
  }
}

</mosaic_0001>

<bundles_post_ra>
// kernel: tpu_custom_call.1
= control target key start
LH: loop header
LB: loop body
LE: loop exit
PB: predicated region body
PF: predicated region fallthrough
CT: control target
= control target key end

     0   :  { %11 = vsyncpa [#allocation3], 0  ;;  %s637_s21 = smov 0   ;;  %s754_s0 = inlined_call_operand.vmem [shape: f32[16,56], index: 0, kind: input, shape index: {}]   ;;  %s755_s1 = inlined_call_operand.vmem [shape: f32[56,128], index: 1, kind: input, shape index: {}]   ;;  %s756_s2 = inlined_call_operand.hbm [shape: f32[2,128,128], index: 2, kind: input, shape index: {}]   ;;  %s757_s3 = inlined_call_operand.vmem [shape: f32[128,8], index: 3, kind: input, shape index: {}]   ;;  %s758_s4 = inlined_call_operand.vmem [shape: f32[8,128], index: 4, kind: input, shape index: {}]   ;;  %s759_s5 = inlined_call_operand.vmem [shape: f32[8,8], index: 5, kind: input, shape index: {}]   ;;  %s760_s6 = inlined_call_operand.vmem [shape: f32[16,8], index: 6, kind: output, shape index: {}]  }
   0x1 LB: > { %s193_s24 = sshll.u32 %s756_s2, 4  ;;  %s512_s25 = sadd.s32 4294967295, %s597_s21   ;;  %s597_s21 = sphi %s637_s21, %s17_s21   ;;  %s194_s24 = int_to_ptr.hbm [resolvable:$true] %s193_s24 }
   0x2   : > { %p514_p0 = scmp.ge.s32.totalorder %s597_s21, 1  ;;  %p179_p1 = scmp.lt.s32.totalorder %s597_s21, 3 }
   0x3   : > { %p533_p2 = scmp.eq.s32.totalorder %s512_s25, 0  ;;  %s599_s26 = smov [#allocation2]  }
   0x4   : > { %p180_p3 = pnand %p514_p0, %p179_p1  ;;  %s195_s27 = sshll.u32 %s599_s26, 4  ;;  %s196_s27 = int_to_ptr.vmem [resolvable:$true] %s195_s27 }
   0x5   : > { %s600_s28 = smov 128   ;;  %s601_s29 = smov 8  }
   0x6   : > { %p529_p4 = pneg %p180_p3  ;;  %227 = sbr.rel (%p180_p3) target bundleno = 591 (0x24f), region = 44 }
   0x8   : > { %p530_p5 = pnand %p533_p2, %p529_p4 }
   0xa   : > { %532 = dma.hbm_to_vmem [thread:$0]  (!%p530_p5), %s194_s24, 4096, %s196_s27, [#allocation3], %s600_s28, %s600_s28, %s601_s29  }
   0xb   : > { %592 = dma.done.wait (%p533_p2), [#allocation3], 4096  }
   0xc   : > { %594 = vsyncadd (%p533_p2), [#allocation3], 4294963200  ;;  %p256_p6 = scmp.lt.s32.totalorder %s512_s25, 1  ;;  %v274_v0 = vld [vmem:[%s755_s1 + $0x30] sm:$0xff]  ;;  %v273_v1 = vld [vmem:[%s755_s1 + $0x28] sm:$0xff]  ;;  %vm276_vm0 = vcmask 457728  }
   0xd   : > { %289 = vmatpush.msra.mxu0 %v274_v0  ;;  %v272_v2 = vld [vmem:[%s755_s1 + $0x20] sm:$0xff]  ;;  %v316_v3 = vld [vmem:[#allocation2 + $0x78] sm:$0xff]  ;;  %v315_v4 = vld [vmem:[#allocation2 + $0x70] sm:$0xff]  ;;  %vm445_vm5 = vcmask 64512  }
   0xe   : > { %s762_s25 = smov (!%p256_p6, %s512_s25), 1  ;;  %318 = vmatpush.msra.mxu1 %v316_v3  ;;  %v271_v5 = vld [vmem:[%s755_s1 + $0x18] sm:$0xff]  ;;  %v314_v6 = vld [vmem:[#allocation2 + $0x68] sm:$0xff]  ;;  %v270_v7 = vld [vmem:[%s755_s1 + $0x10] sm:$0xff] }
   0xf   : > { %290 = vmatpush.msra.mxu0 %v273_v1  ;;  %s519_s14 = sshll.u32 %s762_s25, 3  ;;  %v269_v8 = vld [vmem:[%s755_s1 + $0x8] sm:$0xff]  ;;  %v313_v9 = vld [vmem:[#allocation2 + $0x60] sm:$0xff]  ;;  %v312_v10 = vld [vmem:[#allocation2 + $0x58] sm:$0xff] }
  0x10   : > { %319 = vmatpush.msra.mxu1 %v315_v4  ;;  %s259_s22 = scalar_lea.vmem %s754_s0, %s519_s14  ;;  %v268_v11 = vld [vmem:[%s755_s1] sm:$0xff]  ;;  %v311_v12 = vld [vmem:[#allocation2 + $0x50] sm:$0xff]  ;;  %v310_v14 = vld [vmem:[#allocation2 + $0x48] sm:$0xff]  ;;  %s263_s8 = scalar_lea.vmem %s760_s6, %s519_s14 }
  0x11   : > { %291 = vmatpush.msra.mxu0 %v272_v2  ;;  %v264_v13 = vld [vmem:[%s259_s22] sm:$0xff]  ;;  %v308_v16 = vld [vmem:[#allocation2 + $0x38] sm:$0xff]  ;;  %v307_v17 = vld [vmem:[#allocation2 + $0x30] sm:$0xff] }
  0x12   : > { %320 = vmatpush.msra.mxu1 %v314_v6  ;;  %v309_v15 = vld [vmem:[#allocation2 + $0x40] sm:$0xff]  ;;  %v306_v18 = vld [vmem:[#allocation2 + $0x28] sm:$0xff]  ;;  %v304_v20 = vld [vmem:[#allocation2 + $0x18] sm:$0xff] }
  0x13   : > { %292 = vmatpush.msra.mxu0 %v271_v5  ;;  %v305_v19 = vld [vmem:[#allocation2 + $0x20] sm:$0xff]  ;;  %v303_v21 = vld [vmem:[#allocation2 + $0x10] sm:$0xff]  ;;  %v302_v22 = vld [vmem:[#allocation2 + $0x8] sm:$0xff] }
  0x14   : > { %321 = vmatpush.msra.mxu1 %v313_v9  ;;  %v301_v23 = vld [vmem:[#allocation2] sm:$0xff]  ;;  %v355_v24 = vld [vmem:[#allocation2 + $0xf8] sm:$0xff]  ;;  %v354_v25 = vld [vmem:[#allocation2 + $0xf0] sm:$0xff] }
  0x15   : > { %293 = vmatpush.msra.mxu0 %v270_v7  ;;  %357 = vmatpush.msra.mxu2 %v355_v24  ;;  %v353_v26 = vld [vmem:[#allocation2 + $0xe8] sm:$0xff]  ;;  %v352_v27 = vld [vmem:[#allocation2 + $0xe0] sm:$0xff]  ;;  %v351_v28 = vld [vmem:[#allocation2 + $0xd8] sm:$0xff] }
  0x16   : > { %322 = vmatpush.msra.mxu1 %v312_v10  ;;  %v350_v29 = vld [vmem:[#allocation2 + $0xd0] sm:$0xff]  ;;  %v349_v30 = vld [vmem:[#allocation2 + $0xc8] sm:$0xff]  ;;  %v348_v31 = vld [vmem:[#allocation2 + $0xc0] sm:$0xff] }
  0x17   : > { %294 = vmatpush.msra.mxu0 %v269_v8  ;;  %358 = vmatpush.msra.mxu2 %v354_v25  ;;  %v347_v32 = vld [vmem:[#allocation2 + $0xb8] sm:$0xff]  ;;  %v346_v33 = vld [vmem:[#allocation2 + $0xb0] sm:$0xff]  ;;  %v345_v34 = vld [vmem:[#allocation2 + $0xa8] sm:$0xff] }
  0x18   : > { %323 = vmatpush.msra.mxu1 %v311_v12  ;;  %v344_v35 = vld [vmem:[#allocation2 + $0xa0] sm:$0xff]  ;;  %v343_v36 = vld [vmem:[#allocation2 + $0x98] sm:$0xff]  ;;  %v342_v41 = vld [vmem:[#allocation2 + $0x90] sm:$0xff] }
  0x19   : > { %295 = vmatpush.msra.mxu0 %v268_v11  ;;  %359 = vmatpush.msra.mxu2 %v353_v26  ;;  %v546_v37 = vld [vmem:[%s758_s4] ss:$0 sm:$0xff]  ;;  %v341_v42 = vld [vmem:[#allocation2 + $0x88] sm:$0xff]  ;;  %v393_v44 = vld [vmem:[%s757_s3 + $0x78] sm:$0xff] }
  0x1a   : > { %521 = vmatmul.msk.f32.vlgmr.msra.gmra.mxu0 %vm276_vm0, %v264_v13  ;;  %324 = vmatpush.msra.mxu1 %v310_v14  ;;  %v340_v43 = vld [vmem:[#allocation2 + $0x80] sm:$0xff]  ;;  %v392_v45 = vld [vmem:[%s757_s3 + $0x70] sm:$0xff]  ;;  %v391_v46 = vld [vmem:[%s757_s3 + $0x68] sm:$0xff] }
  0x1b   : > { %360 = vmatpush.msra.mxu2 %v352_v27  ;;  %396 = vmatpush.msra.mxu3 %v393_v44  ;;  %v390_v47 = vld [vmem:[%s757_s3 + $0x60] sm:$0xff]  ;;  %v389_v48 = vld [vmem:[%s757_s3 + $0x58] sm:$0xff]  ;;  %v388_v49 = vld [vmem:[%s757_s3 + $0x50] sm:$0xff] }
  0x1c   : > { %325 = vmatpush.msra.mxu1 %v309_v15  ;;  %v387_v50 = vld [vmem:[%s757_s3 + $0x48] sm:$0xff]  ;;  %v386_v51 = vld [vmem:[%s757_s3 + $0x40] sm:$0xff]  ;;  %v385_v52 = vld [vmem:[%s757_s3 + $0x38] sm:$0xff] }
  0x1d   : > { %361 = vmatpush.msra.mxu2 %v351_v28  ;;  %397 = vmatpush.msra.mxu3 %v392_v45  ;;  %v384_v53 = vld [vmem:[%s757_s3 + $0x30] sm:$0xff]  ;;  %v383_v54 = vld [vmem:[%s757_s3 + $0x28] sm:$0xff]  ;;  %v382_v55 = vld [vmem:[%s757_s3 + $0x20] sm:$0xff] }
  0x1e   : > { %326 = vmatpush.msra.mxu1 %v308_v16  ;;  %v381_v56 = vld [vmem:[%s757_s3 + $0x18] sm:$0xff]  ;;  %v547_v57 = vld [vmem:[%s758_s4 + $0x1] ss:$0 sm:$0xff]  ;;  %v380_v61 = vld [vmem:[%s757_s3 + $0x10] sm:$0xff] }
  0x1f   : > { %362 = vmatpush.msra.mxu2 %v350_v29  ;;  %398 = vmatpush.msra.mxu3 %v391_v46  ;;  %v379_v62 = vld [vmem:[%s757_s3 + $0x8] sm:$0xff]  ;;  %v378_v63 = vld [vmem:[%s757_s3] sm:$0xff] }
  0x20   : > { %327 = vmatpush.msra.mxu1 %v307_v17  ;;  %v548_v0 = vld [vmem:[%s758_s4 + $0x2] ss:$0 sm:$0xff]  ;;  %v549_v4 = vld [vmem:[%s759_s5] ss:$0 sm:$0xff]  ;;  %v550_v17 = vld [vmem:[%s759_s5 + $0x1] ss:$0 sm:$0xff] }
  0x21   : > { %363 = vmatpush.msra.mxu2 %v349_v30  ;;  %399 = vmatpush.msra.mxu3 %v390_v47  ;;  %v552_v24 = vld [vmem:[%s759_s5 + $0x3] ss:$0 sm:$0xff] }
  0x22   : > { %328 = vmatpush.msra.mxu1 %v306_v18  ;;  %v551_v18 = vld [vmem:[%s759_s5 + $0x2] ss:$0 sm:$0xff] }
  0x23   : > { %364 = vmatpush.msra.mxu2 %v348_v31  ;;  %400 = vmatpush.msra.mxu3 %v389_v48 }
  0x24   : > { %329 = vmatpush.msra.mxu1 %v305_v19 }
  0x25   : > { %365 = vmatpush.msra.mxu2 %v347_v32  ;;  %401 = vmatpush.msra.mxu3 %v388_v49 }
  0x26   : > { %330 = vmatpush.msra.mxu1 %v304_v20 }
  0x27   : > { %366 = vmatpush.msra.mxu2 %v346_v33  ;;  %402 = vmatpush.msra.mxu3 %v387_v50 }
  0x28   : > { %331 = vmatpush.msra.mxu1 %v303_v21 }
  0x29   : > { %367 = vmatpush.msra.mxu2 %v345_v34  ;;  %403 = vmatpush.msra.mxu3 %v386_v51 }
  0x2a   : > { %332 = vmatpush.msra.mxu1 %v302_v22 }
  0x2b   : > { %368 = vmatpush.msra.mxu2 %v344_v35  ;;  %404 = vmatpush.msra.mxu3 %v385_v52 }
  0x2c   : > { %333 = vmatpush.msra.mxu1 %v301_v23 }
  0x2d   : > { %369 = vmatpush.msra.mxu2 %v343_v36  ;;  %405 = vmatpush.msra.mxu3 %v384_v53 }
  0x2f   : > { %370 = vmatpush.msra.mxu2 %v342_v41  ;;  %406 = vmatpush.msra.mxu3 %v383_v54 }
  0x31   : > { %371 = vmatpush.msra.mxu2 %v341_v42  ;;  %407 = vmatpush.msra.mxu3 %v382_v55 }
  0x33   : > { %372 = vmatpush.msra.mxu2 %v340_v43  ;;  %408 = vmatpush.msra.mxu3 %v381_v56 }
  0x35   : > { %409 = vmatpush.msra.mxu3 %v380_v61 }
  0x37   : > { %410 = vmatpush.msra.mxu3 %v379_v62 }
  0x39   : > { %411 = vmatpush.msra.mxu3 %v378_v63 }
  0x97   : > { %v297_v38 = vpop.f32.mrf.mxu0 }
  0x98   : > { %v298_v39 = vadd.f32 %v546_v37, %v297_v38 }
  0x9a   : > { %v300_v40 = vmax.f32 %v298_v39, 0.0 }
  0x9c   : > { %334 = vmatmul.f32.vlgmr.msra.gmra.mxu1 %v300_v40 }
 0x119   : > { %v335_v58 = vpop.f32.mrf.mxu1 }
 0x11a   : > { %v336_v59 = vadd.f32 %v547_v57, %v335_v58 }
 0x11c   : > { %v338_v60 = vmax.f32 %v336_v59, 0.0 }
 0x11e   : > { %373 = vmatmul.f32.vlgmr.msra.gmra.mxu2 %v338_v60 }
 0x1a1   : > { %v374_v1 = vpop.f32.mrf.mxu2 }
 0x1a2   : > { %v375_v2 = vadd.f32 %v548_v0, %v374_v1 }
 0x1a4   : > { %v377_v3 = vmax.f32 %v375_v2, 0.0 }
 0x1a6   : > { %412 = vmatmul.f32.vlgmr.msra.gmra.mxu3 %v377_v3 }
 0x229   : > { %v413_v5 = vpop.f32.mrf.mxu3 }
 0x22a   : > { %v414_v6 = vadd.f32 %v549_v4, %v413_v5 }
 0x22c   : > { %v522_v7 = vmul.f32 -1.442695, %v414_v6  ;;  %v440_v23 = vmul.f32 %v551_v18, %v414_v6 }
 0x22e   : > { %553 = vpow2.f32 %v522_v7 }
 0x234   : > { %v554_v8 = vpop.eup %553 }
 0x235   : > { %v419_v9 = vadd.f32 1.0, %v554_v8 }
 0x237   : > { %555 = vrcp.f32 %v419_v9  ;;  %v431_v13 = vand.u32 2147483648, %v419_v9  ;;  %v429_v15 = vand.u32 2147483647, %v419_v9  ;;  %vm425_vm2 = vweird.f32 %v419_v9 }
 0x239   : > { %v432_v19 = vor.u32 1.1754944e-38, %v431_v13  ;;  %vm430_vm4 = vcmp.eq.f32.partialorder %v429_v15, 8.507059e+37 }
 0x23d   : > { %v556_v10 = vpop.eup %555 }
 0x23e   : > { %v421_v11 = vmul.f32 %v556_v10, %v419_v9  ;;  %vm426_vm1 = vweird.f32 %v556_v10 }
 0x23f   : > { %vm427_vm3 = vmor %vm425_vm2, %vm426_vm1 }
 0x240   : > { %v422_v12 = vsub.f32 1.0, %v421_v11 }
 0x242   : > { %v423_v14 = vmul.f32 %v556_v10, %v422_v12 }
 0x244   : > { %v424_v16 = vadd.f32 %v556_v10, %v423_v14 }
 0x246   : > { %v428_v20 = vsel %vm427_vm3, %v556_v10, %v424_v16 }
 0x247   : > { %v433_v21 = vsel %vm430_vm4, %v432_v19, %v428_v20 }
 0x248   : > { %v437_v22 = vmul.f32 %v550_v17, %v433_v21 }
 0x24a   : > { %v441_v25 = vadd.f32 %v440_v23, %v437_v22 }
 0x24c   : > { %v444_v26 = vadd.f32 %v552_v24, %v441_v25 }
 0x24e   : > { %446 = vst.msk [vmem:[%s263_s8] sm:$0xff] %vm445_vm5, %v444_v26 }
 0x24f PF: > { %s17_s21 = sadd.s32 1, %s597_s21  }
 0x250   : > { %p14_p7 = scmp.ge.s32.totalorder %s17_s21, 4  }
 0x252   :  { %16 = sbr.rel (!%p14_p7) target bundleno = 1 (0x1), region = 80 }
 0x257   :  { %466 = vsyncpa [#allocation3], 1 }
 0x258   :  { %468 = vsyncpa [#allocation3 + $0x1], 1 }

</bundles_post_ra>
